<compile_context>
chip_gen: v6e
topology: v6e:2x2x1
jax: 0.10.0
libtpu: 0.0.40
codegen_flags: <defaults>
</compile_context>

<pallas_src>
import functools

import jax
import jax.numpy as jnp
from jax.experimental import pallas as pl
from jax.experimental.pallas import tpu as pltpu


def block_kernel(x_ref, g1_ref, b1_ref, wq_ref, wk_ref, wv_ref, wp_ref, bp_ref,
                 g2_ref, b2_ref, w1_ref, bm1_ref, w2_ref, bm2_ref, o_ref,
                 *, num_heads, scale, eps, q_tile):
    f32 = jnp.float32
    bf16 = jnp.bfloat16

    t = pl.program_id(1)
    row0 = pl.multiple_of(t * q_tile, q_tile)

    # Full token set (K/V source) and this tile's query tokens.
    xf = x_ref[0].astype(f32)                                   # (N, C)
    xq = x_ref[0, pl.ds(row0, q_tile), :].astype(f32)           # (tq, C)
    N, C = xf.shape

    def layernorm(v, g, b):
        mu = jnp.mean(v, axis=-1, keepdims=True)
        var = jnp.mean((v - mu) ** 2, axis=-1, keepdims=True)
        return (v - mu) * jax.lax.rsqrt(var + eps) * g + b

    # ---- Attention branch: attn(norm1(x)) ----
    xn_kv = layernorm(xf, g1_ref[...], b1_ref[...]).astype(bf16)    # (N, C)
    xn_q = layernorm(xq, g1_ref[...], b1_ref[...]).astype(bf16)     # (tq, C)

    # Head-batched projections: weights are pre-split per head in the wrapper,
    # so q/k/v are produced directly in (nh, tokens, hd) layout (no relayouts).
    xb_q = jnp.broadcast_to(xn_q, (num_heads,) + xn_q.shape)        # (nh, tq, C)
    xb_kv = jnp.broadcast_to(xn_kv, (num_heads,) + xn_kv.shape)     # (nh, N, C)

    q = jnp.einsum('hqc,hcd->hqd', xb_q, wq_ref[...], preferred_element_type=f32)
    k = jnp.einsum('hkc,hcd->hkd', xb_kv, wk_ref[...], preferred_element_type=f32)
    v = jnp.einsum('hkc,hcd->hkd', xb_kv, wv_ref[...], preferred_element_type=f32)

    qb = (q * scale).astype(bf16)
    kb = k.astype(bf16)
    vb = v.astype(bf16)

    s = jnp.einsum('hqd,hkd->hqk', qb, kb, preferred_element_type=f32)   # (nh, tq, N)
    m = jnp.max(s, axis=-1, keepdims=True)
    p = jnp.exp(s - m)
    denom = jnp.sum(p, axis=-1, keepdims=True)
    p = p * pl.reciprocal(denom, approx=True)                            # EUP, not VPU divide

    o_h = jnp.einsum('hqk,hkd->hqd', p.astype(bf16), vb,
                     preferred_element_type=f32)                         # (nh, tq, hd)
    # Fold the output projection per head and reduce over heads -> no lane-dim concat.
    proj_h = jnp.einsum('hqd,hdc->hqc', o_h.astype(bf16), wp_ref[...],
                        preferred_element_type=f32)                      # (nh, tq, C)
    attn_out = jnp.sum(proj_h, axis=0) + bp_ref[...]                     # (tq, C)

    x1 = xq + attn_out                                                   # residual 1

    # ---- MLP branch: mlp(norm2(x)) ----
    xn2 = layernorm(x1, g2_ref[...], b2_ref[...]).astype(bf16)
    h1 = jnp.dot(xn2, w1_ref[...], preferred_element_type=f32) + bm1_ref[...]
    h1 = jax.nn.gelu(h1, approximate=True)          # tanh-GELU -> EUP, overlaps with MXU
    mlp = jnp.dot(h1.astype(bf16), w2_ref[...], preferred_element_type=f32) + bm2_ref[...]

    o_ref[0] = (x1 + mlp).astype(o_ref.dtype)                            # residual 2


def _pick_q_tile(N, cap=256):
    if N <= cap:
        return N
    for t in range(cap - cap % 8, 7, -8):
        if N % t == 0:
            return t
    return N


def vit_block_pallas(x, params, *, num_heads, eps=1e-5, q_tile=None):
    B, N, C = x.shape
    Hm = params["w1_t"].shape[1]
    nh = num_heads
    hd = C // nh
    scale = hd ** (-0.5)
    bf16 = jnp.bfloat16

    if q_tile is None:
        q_tile = _pick_q_tile(N)
    assert N % q_tile == 0 and (q_tile % 8 == 0 or q_tile == N)
    nq = N // q_tile

    # --- per-head bf16 weights (split once in the wrapper, not in the hot kernel) ---
    wqkv_t = params["wqkv_t"]                                      # (C, 3C)

    def head_split(w_cols):                                        # (C, C) -> (nh, C, hd)
        return w_cols.reshape(C, nh, hd).transpose(1, 0, 2)

    wq_h = head_split(wqkv_t[:, 0:C]).astype(bf16)
    wk_h = head_split(wqkv_t[:, C:2 * C]).astype(bf16)
    wv_h = head_split(wqkv_t[:, 2 * C:3 * C]).astype(bf16)
    wp_h = params["wproj_t"].reshape(nh, hd, C).astype(bf16)       # (nh, hd, C)
    w1_b = params["w1_t"].astype(bf16)                             # (C, Hm)
    w2_b = params["w2_t"].astype(bf16)                             # (Hm, C)

    args = (
        x,
        params["g1"], params["b1"],
        wq_h, wk_h, wv_h, wp_h, params["bproj"],
        params["g2"], params["b2"],
        w1_b, params["bm1"], w2_b, params["bm2"],
    )

    kernel = functools.partial(block_kernel, num_heads=nh, scale=scale, eps=eps,
                               q_tile=q_tile)

    def const_map(nd):
        return lambda b, t, _nd=nd: (0,) * _nd

    # TODO(synk): single-buffer the grid-invariant weight BlockSpecs (pl.Buffered(1)) and
    # add a flash-style KV inner loop once validated on this jax version.
    in_specs = [pl.BlockSpec((1, N, C), lambda b, t: (b, 0, 0))]
    in_specs += [pl.BlockSpec(a.shape, const_map(a.ndim)) for a in args[1:]]
    out_specs = pl.BlockSpec((1, q_tile, C), lambda b, t: (b, t, 0))

    # --- VMEM budget (weights double-buffered + f32 activation working set, with margin) ---
    weight_bytes = sum(int(a.size) * a.dtype.itemsize for a in args[1:])
    act_bytes = 4 * (2 * N * C + 3 * nh * N * hd + nh * q_tile * N
                     + nh * q_tile * C + 2 * q_tile * Hm + 6 * q_tile * C)
    vmem_limit = int(min(100 * 2 ** 20,
                         max(32 * 2 ** 20, 2 * weight_bytes + 4 * act_bytes + 2 ** 20)))

    # --- advisory cost estimate for the XLA scheduler ---
    flops = B * (2 * N * C * 3 * C        # qkv
                 + 4 * N * N * C          # scores + attn@v
                 + 2 * N * C * C          # proj
                 + 4 * N * C * Hm)        # mlp
    transcendentals = B * (nh * N * N + N * Hm)
    bytes_accessed = 2 * int(x.size) * x.dtype.itemsize + weight_bytes
    cost = pl.CostEstimate(flops=int(flops), transcendentals=int(transcendentals),
                           bytes_accessed=int(bytes_accessed))

    return pl.pallas_call(
        kernel,
        out_shape=jax.ShapeDtypeStruct((B, N, C), x.dtype),
        grid_spec=pltpu.PrefetchScalarGridSpec(
            num_scalar_prefetch=0,
            grid=(B, nq),
            in_specs=in_specs,
            out_specs=out_specs,
        ),
        compiler_params=pltpu.CompilerParams(
            dimension_semantics=("parallel", "parallel"),
            vmem_limit_bytes=vmem_limit,
        ),
        cost_estimate=cost,
    )(*args)


def vit_block_reference(x, params, *, num_heads, eps=1e-5):
    """Plain-JAX reference mirroring the PyTorch Block forward (f32, exact-erf GELU)."""
    B, N, C = x.shape
    hd = C // num_heads
    scale = hd ** (-0.5)

    def ln(v, g, b):
        mu = jnp.mean(v, axis=-1, keepdims=True)
        var = jnp.mean((v - mu) ** 2, axis=-1, keepdims=True)
        return (v - mu) / jnp.sqrt(var + eps) * g + b

    dot = functools.partial(jnp.matmul, precision=jax.lax.Precision.HIGHEST)

    xn = ln(x, params["g1"][0], params["b1"][0])
    qkv = dot(xn, params["wqkv_t"])                        # (B, N, 3C)
    qkv = qkv.reshape(B, N, 3, num_heads, hd).transpose(2, 0, 3, 1, 4)
    q, k, v = qkv[0], qkv[1], qkv[2]                       # (B, h, N, hd)
    attn = dot(q, jnp.swapaxes(k, -2, -1)) * scale
    attn = jax.nn.softmax(attn, axis=-1)
    out = dot(attn, v)                                     # (B, h, N, hd)
    out = out.transpose(0, 2, 1, 3).reshape(B, N, C)
    out = dot(out, params["wproj_t"]) + params["bproj"][0]
    x = x + out

    xn2 = ln(x, params["g2"][0], params["b2"][0])
    h1 = jax.nn.gelu(dot(xn2, params["w1_t"]) + params["bm1"][0], approximate=False)
    x = x + dot(h1, params["w2_t"]) + params["bm2"][0]
    return x


def make_params(key, dim, num_heads, mlp_ratio=4.0):
    H = int(dim * mlp_ratio)
    ks = jax.random.split(key, 6)
    std = 0.02
    wqkv = std * jax.random.normal(ks[0], (3 * dim, dim), jnp.float32)   # torch layout (out, in)
    wproj = std * jax.random.normal(ks[1], (dim, dim), jnp.float32)
    bproj = std * jax.random.normal(ks[2], (dim,), jnp.float32)
    w1 = std * jax.random.normal(ks[3], (H, dim), jnp.float32)
    bm1 = std * jax.random.normal(ks[4], (H,), jnp.float32)
    w2 = std * jax.random.normal(ks[5], (dim, H), jnp.float32)
    bm2 = jnp.zeros((dim,), jnp.float32)
    return {
        "g1": jnp.ones((1, dim), jnp.float32),
        "b1": jnp.zeros((1, dim), jnp.float32),
        "g2": jnp.ones((1, dim), jnp.float32),
        "b2": jnp.zeros((1, dim), jnp.float32),
        "wqkv_t": wqkv.T,            # (dim, 3*dim)
        "wproj_t": wproj.T,          # (dim, dim)
        "bproj": bproj.reshape(1, dim),
        "w1_t": w1.T,                # (dim, H)
        "bm1": bm1.reshape(1, H),
        "w2_t": w2.T,                # (H, dim)
        "bm2": bm2.reshape(1, dim),
    }


if __name__ == "__main__":
    B, N, C = 2, 16, 32
    num_heads = 4
    q_tile = 8                      # -> grid = (B, 2): exercises the token-tile axis

    key = jax.random.PRNGKey(0)
    kx, kp = jax.random.split(key)
    x = jax.random.normal(kx, (B, N, C), jnp.float32)
    params = make_params(kp, C, num_heads)

    y = vit_block_pallas(x, params, num_heads=num_heads, q_tile=q_tile)
    y = jax.block_until_ready(y)

    y_ref = vit_block_reference(x, params, num_heads=num_heads)
    assert y.shape == (B, N, C)
    err = jnp.max(jnp.abs(y - y_ref))
    assert err < 2e-2, f"mismatch vs reference: {err}"

    print("KERNEL_OK")
</pallas_src>

<mosaic_0001>
module attributes {stable_mosaic.version = 11 : i64} {
  func.func @block_kernel(%arg0: i32, %arg1: i32, %arg2: memref<1x16x32xf32, #tpu.memory_space<vmem>>, %arg3: memref<1x32xf32, #tpu.memory_space<vmem>>, %arg4: memref<1x32xf32, #tpu.memory_space<vmem>>, %arg5: memref<4x32x8xbf16, #tpu.memory_space<vmem>>, %arg6: memref<4x32x8xbf16, #tpu.memory_space<vmem>>, %arg7: memref<4x32x8xbf16, #tpu.memory_space<vmem>>, %arg8: memref<4x8x32xbf16, #tpu.memory_space<vmem>>, %arg9: memref<1x32xf32, #tpu.memory_space<vmem>>, %arg10: memref<1x32xf32, #tpu.memory_space<vmem>>, %arg11: memref<1x32xf32, #tpu.memory_space<vmem>>, %arg12: memref<32x128xbf16, #tpu.memory_space<vmem>>, %arg13: memref<1x128xf32, #tpu.memory_space<vmem>>, %arg14: memref<128x32xbf16, #tpu.memory_space<vmem>>, %arg15: memref<1x32xf32, #tpu.memory_space<vmem>>, %arg16: memref<1x8x32xf32, #tpu.memory_space<vmem>>) attributes {dimension_semantics = [#tpu.dimension_semantics<parallel>, #tpu.dimension_semantics<parallel>], iteration_bounds = array<i64: 2, 2>, scalar_prefetch = 0 : i64, scratch_operands = 0 : i64, tpu.core_type = #tpu.core_type<tc>, window_params = [{transform_indices = @transform_0, window_bounds = array<i64: 1, 16, 32>}, {pipeline_mode = #tpu.pipeline_mode<synchronous>, transform_indices = @transform_1, window_bounds = array<i64: 1, 32>}, {pipeline_mode = #tpu.pipeline_mode<synchronous>, transform_indices = @transform_2, window_bounds = array<i64: 1, 32>}, {pipeline_mode = #tpu.pipeline_mode<synchronous>, transform_indices = @transform_3, window_bounds = array<i64: 4, 32, 8>}, {pipeline_mode = #tpu.pipeline_mode<synchronous>, transform_indices = @transform_4, window_bounds = array<i64: 4, 32, 8>}, {pipeline_mode = #tpu.pipeline_mode<synchronous>, transform_indices = @transform_5, window_bounds = array<i64: 4, 32, 8>}, {pipeline_mode = #tpu.pipeline_mode<synchronous>, transform_indices = @transform_6, window_bounds = array<i64: 4, 8, 32>}, {pipeline_mode = #tpu.pipeline_mode<synchronous>, transform_indices = @transform_7, window_bounds = array<i64: 1, 32>}, {pipeline_mode = #tpu.pipeline_mode<synchronous>, transform_indices = @transform_8, window_bounds = array<i64: 1, 32>}, {pipeline_mode = #tpu.pipeline_mode<synchronous>, transform_indices = @transform_9, window_bounds = array<i64: 1, 32>}, {pipeline_mode = #tpu.pipeline_mode<synchronous>, transform_indices = @transform_10, window_bounds = array<i64: 32, 128>}, {pipeline_mode = #tpu.pipeline_mode<synchronous>, transform_indices = @transform_11, window_bounds = array<i64: 1, 128>}, {pipeline_mode = #tpu.pipeline_mode<synchronous>, transform_indices = @transform_12, window_bounds = array<i64: 128, 32>}, {pipeline_mode = #tpu.pipeline_mode<synchronous>, transform_indices = @transform_13, window_bounds = array<i64: 1, 32>}, {transform_indices = @transform_14, window_bounds = array<i64: 1, 8, 32>}]} {
    %c8_i32 = arith.constant 8 : i32
    %0 = arith.muli %arg1, %c8_i32 : i32
    %1 = tpu.assume_multiple %0, 8 : i32
    %c0 = arith.constant 0 : index
    %c0_0 = arith.constant 0 : index
    %c0_1 = arith.constant 0 : index
    %2 = vector.load %arg2[%c0, %c0_0, %c0_1] : memref<1x16x32xf32, #tpu.memory_space<vmem>>, vector<1x16x32xf32>
    %3 = vector.shape_cast %2 : vector<1x16x32xf32> to vector<16x32xf32>
    %c0_2 = arith.constant 0 : index
    %4 = arith.index_cast %1 : i32 to index
    %c0_3 = arith.constant 0 : index
    %5 = vector.load %arg2[%c0_2, %4, %c0_3] : memref<1x16x32xf32, #tpu.memory_space<vmem>>, vector<1x8x32xf32>
    %6 = vector.shape_cast %5 : vector<1x8x32xf32> to vector<8x32xf32>
    %c0_4 = arith.constant 0 : index
    %c0_5 = arith.constant 0 : index
    %7 = vector.load %arg3[%c0_4, %c0_5] : memref<1x32xf32, #tpu.memory_space<vmem>>, vector<1x32xf32>
    %c0_6 = arith.constant 0 : index
    %c0_7 = arith.constant 0 : index
    %8 = vector.load %arg4[%c0_6, %c0_7] : memref<1x32xf32, #tpu.memory_space<vmem>>, vector<1x32xf32>
    %cst = arith.constant dense<0.000000e+00> : vector<16xf32>
    %9 = vector.multi_reduction <add>, %3, %cst [1] : vector<16x32xf32> to vector<16xf32>
    %10 = vector.shape_cast %9 : vector<16xf32> to vector<16x1xf32>
    %cst_8 = arith.constant 3.200000e+01 : f32
    %11 = vector.broadcast %cst_8 : f32 to vector<16x1xf32>
    %12 = arith.divf %10, %11 : vector<16x1xf32>
    %13 = vector.broadcast %12 : vector<16x1xf32> to vector<16x32xf32>
    %14 = arith.subf %3, %13 : vector<16x32xf32>
    %15 = arith.mulf %14, %14 : vector<16x32xf32>
    %cst_9 = arith.constant dense<0.000000e+00> : vector<16xf32>
    %16 = vector.multi_reduction <add>, %15, %cst_9 [1] : vector<16x32xf32> to vector<16xf32>
    %17 = vector.shape_cast %16 : vector<16xf32> to vector<16x1xf32>
    %cst_10 = arith.constant 3.200000e+01 : f32
    %18 = vector.broadcast %cst_10 : f32 to vector<16x1xf32>
    %19 = arith.divf %17, %18 : vector<16x1xf32>
    %20 = vector.broadcast %12 : vector<16x1xf32> to vector<16x32xf32>
    %21 = arith.subf %3, %20 : vector<16x32xf32>
    %cst_11 = arith.constant 9.99999974E-6 : f32
    %22 = vector.broadcast %cst_11 : f32 to vector<16x1xf32>
    %23 = arith.addf %19, %22 : vector<16x1xf32>
    %24 = math.rsqrt %23 : vector<16x1xf32>
    %25 = vector.broadcast %24 : vector<16x1xf32> to vector<16x32xf32>
    %26 = arith.mulf %21, %25 : vector<16x32xf32>
    %27 = vector.broadcast %7 : vector<1x32xf32> to vector<16x32xf32>
    %28 = arith.mulf %26, %27 : vector<16x32xf32>
    %29 = vector.broadcast %8 : vector<1x32xf32> to vector<16x32xf32>
    %30 = arith.addf %28, %29 : vector<16x32xf32>
    %31 = arith.truncf %30 : vector<16x32xf32> to vector<16x32xbf16>
    %c0_12 = arith.constant 0 : index
    %c0_13 = arith.constant 0 : index
    %32 = vector.load %arg3[%c0_12, %c0_13] : memref<1x32xf32, #tpu.memory_space<vmem>>, vector<1x32xf32>
    %c0_14 = arith.constant 0 : index
    %c0_15 = arith.constant 0 : index
    %33 = vector.load %arg4[%c0_14, %c0_15] : memref<1x32xf32, #tpu.memory_space<vmem>>, vector<1x32xf32>
    %cst_16 = arith.constant dense<0.000000e+00> : vector<8xf32>
    %34 = vector.multi_reduction <add>, %6, %cst_16 [1] : vector<8x32xf32> to vector<8xf32>
    %35 = vector.shape_cast %34 : vector<8xf32> to vector<8x1xf32>
    %cst_17 = arith.constant 3.200000e+01 : f32
    %36 = vector.broadcast %cst_17 : f32 to vector<8x1xf32>
    %37 = arith.divf %35, %36 : vector<8x1xf32>
    %38 = vector.broadcast %37 : vector<8x1xf32> to vector<8x32xf32>
    %39 = arith.subf %6, %38 : vector<8x32xf32>
    %40 = arith.mulf %39, %39 : vector<8x32xf32>
    %cst_18 = arith.constant dense<0.000000e+00> : vector<8xf32>
    %41 = vector.multi_reduction <add>, %40, %cst_18 [1] : vector<8x32xf32> to vector<8xf32>
    %42 = vector.shape_cast %41 : vector<8xf32> to vector<8x1xf32>
    %cst_19 = arith.constant 3.200000e+01 : f32
    %43 = vector.broadcast %cst_19 : f32 to vector<8x1xf32>
    %44 = arith.divf %42, %43 : vector<8x1xf32>
    %45 = vector.broadcast %37 : vector<8x1xf32> to vector<8x32xf32>
    %46 = arith.subf %6, %45 : vector<8x32xf32>
    %cst_20 = arith.constant 9.99999974E-6 : f32
    %47 = vector.broadcast %cst_20 : f32 to vector<8x1xf32>
    %48 = arith.addf %44, %47 : vector<8x1xf32>
    %49 = math.rsqrt %48 : vector<8x1xf32>
    %50 = vector.broadcast %49 : vector<8x1xf32> to vector<8x32xf32>
    %51 = arith.mulf %46, %50 : vector<8x32xf32>
    %52 = vector.broadcast %32 : vector<1x32xf32> to vector<8x32xf32>
    %53 = arith.mulf %51, %52 : vector<8x32xf32>
    %54 = vector.broadcast %33 : vector<1x32xf32> to vector<8x32xf32>
    %55 = arith.addf %53, %54 : vector<8x32xf32>
    %56 = arith.truncf %55 : vector<8x32xf32> to vector<8x32xbf16>
    %57 = vector.shape_cast %56 : vector<8x32xbf16> to vector<1x8x32xbf16>
    %58 = vector.broadcast %57 : vector<1x8x32xbf16> to vector<4x8x32xbf16>
    %59 = vector.shape_cast %31 : vector<16x32xbf16> to vector<1x16x32xbf16>
    %60 = vector.broadcast %59 : vector<1x16x32xbf16> to vector<4x16x32xbf16>
    %c0_21 = arith.constant 0 : index
    %c0_22 = arith.constant 0 : index
    %c0_23 = arith.constant 0 : index
    %61 = vector.load %arg5[%c0_21, %c0_22, %c0_23] : memref<4x32x8xbf16, #tpu.memory_space<vmem>>, vector<4x32x8xbf16>
    "tpu.trace_start"() <{level = 10 : i32, message = "hqc,hcd->hqd"}> : () -> ()
    %cst_24 = arith.constant dense<0.000000e+00> : vector<4x8x8xf32>
    %62 = tpu.matmul %58, %61, %cst_24 {dimension_numbers = #tpu.dot_dimension_numbers<[2], [1], [1], [2], [0, 0, 0, 1, 1, 2], [0], [0]>} : vector<4x8x32xbf16>, vector<4x32x8xbf16>, vector<4x8x8xf32> -> vector<4x8x8xf32>
    "tpu.trace_stop"() : () -> ()
    %c0_25 = arith.constant 0 : index
    %c0_26 = arith.constant 0 : index
    %c0_27 = arith.constant 0 : index
    %63 = vector.load %arg6[%c0_25, %c0_26, %c0_27] : memref<4x32x8xbf16, #tpu.memory_space<vmem>>, vector<4x32x8xbf16>
    "tpu.trace_start"() <{level = 10 : i32, message = "hkc,hcd->hkd"}> : () -> ()
    %cst_28 = arith.constant dense<0.000000e+00> : vector<4x16x8xf32>
    %64 = tpu.matmul %60, %63, %cst_28 {dimension_numbers = #tpu.dot_dimension_numbers<[2], [1], [1], [2], [0, 0, 0, 1, 1, 2], [0], [0]>} : vector<4x16x32xbf16>, vector<4x32x8xbf16>, vector<4x16x8xf32> -> vector<4x16x8xf32>
    "tpu.trace_stop"() : () -> ()
    %c0_29 = arith.constant 0 : index
    %c0_30 = arith.constant 0 : index
    %c0_31 = arith.constant 0 : index
    %65 = vector.load %arg7[%c0_29, %c0_30, %c0_31] : memref<4x32x8xbf16, #tpu.memory_space<vmem>>, vector<4x32x8xbf16>
    "tpu.trace_start"() <{level = 10 : i32, message = "hkc,hcd->hkd"}> : () -> ()
    %cst_32 = arith.constant dense<0.000000e+00> : vector<4x16x8xf32>
    %66 = tpu.matmul %60, %65, %cst_32 {dimension_numbers = #tpu.dot_dimension_numbers<[2], [1], [1], [2], [0, 0, 0, 1, 1, 2], [0], [0]>} : vector<4x16x32xbf16>, vector<4x32x8xbf16>, vector<4x16x8xf32> -> vector<4x16x8xf32>
    "tpu.trace_stop"() : () -> ()
    %cst_33 = arith.constant 0.353553385 : f32
    %67 = vector.broadcast %cst_33 : f32 to vector<4x8x8xf32>
    %68 = arith.mulf %62, %67 : vector<4x8x8xf32>
    %69 = arith.truncf %68 : vector<4x8x8xf32> to vector<4x8x8xbf16>
    %70 = arith.truncf %64 : vector<4x16x8xf32> to vector<4x16x8xbf16>
    %71 = arith.truncf %66 : vector<4x16x8xf32> to vector<4x16x8xbf16>
    "tpu.trace_start"() <{level = 10 : i32, message = "hqd,hkd->hqk"}> : () -> ()
    %cst_34 = arith.constant dense<0.000000e+00> : vector<4x8x16xf32>
    %72 = tpu.matmul %69, %70, %cst_34 {dimension_numbers = #tpu.dot_dimension_numbers<[2], [2], [1], [1], [0, 0, 0, 1, 1, 1], [0], [0]>} : vector<4x8x8xbf16>, vector<4x16x8xbf16>, vector<4x8x16xf32> -> vector<4x8x16xf32>
    "tpu.trace_stop"() : () -> ()
    %cst_35 = arith.constant dense<0xFF800000> : vector<4x8xf32>
    %73 = vector.multi_reduction <maximumf>, %72, %cst_35 [2] : vector<4x8x16xf32> to vector<4x8xf32>
    %74 = vector.shape_cast %73 : vector<4x8xf32> to vector<4x8x1xf32>
    %75 = vector.broadcast %74 : vector<4x8x1xf32> to vector<4x8x16xf32>
    %76 = arith.subf %72, %75 : vector<4x8x16xf32>
    %77 = math.exp %76 : vector<4x8x16xf32>
    %cst_36 = arith.constant dense<0.000000e+00> : vector<4x8xf32>
    %78 = vector.multi_reduction <add>, %77, %cst_36 [2] : vector<4x8x16xf32> to vector<4x8xf32>
    %79 = vector.shape_cast %78 : vector<4x8xf32> to vector<4x8x1xf32>
    %80 = tpu.reciprocal %79 {approx = true} : vector<4x8x1xf32> -> vector<4x8x1xf32>
    %81 = vector.broadcast %80 : vector<4x8x1xf32> to vector<4x8x16xf32>
    %82 = arith.mulf %77, %81 : vector<4x8x16xf32>
    %83 = arith.truncf %82 : vector<4x8x16xf32> to vector<4x8x16xbf16>
    "tpu.trace_start"() <{level = 10 : i32, message = "hqk,hkd->hqd"}> : () -> ()
    %cst_37 = arith.constant dense<0.000000e+00> : vector<4x8x8xf32>
    %84 = tpu.matmul %83, %71, %cst_37 {dimension_numbers = #tpu.dot_dimension_numbers<[2], [1], [1], [2], [0, 0, 0, 1, 1, 2], [0], [0]>} : vector<4x8x16xbf16>, vector<4x16x8xbf16>, vector<4x8x8xf32> -> vector<4x8x8xf32>
    "tpu.trace_stop"() : () -> ()
    %85 = arith.truncf %84 : vector<4x8x8xf32> to vector<4x8x8xbf16>
    %c0_38 = arith.constant 0 : index
    %c0_39 = arith.constant 0 : index
    %c0_40 = arith.constant 0 : index
    %86 = vector.load %arg8[%c0_38, %c0_39, %c0_40] : memref<4x8x32xbf16, #tpu.memory_space<vmem>>, vector<4x8x32xbf16>
    "tpu.trace_start"() <{level = 10 : i32, message = "hqd,hdc->hqc"}> : () -> ()
    %cst_41 = arith.constant dense<0.000000e+00> : vector<4x8x32xf32>
    %87 = tpu.matmul %85, %86, %cst_41 {dimension_numbers = #tpu.dot_dimension_numbers<[2], [1], [1], [2], [0, 0, 0, 1, 1, 2], [0], [0]>} : vector<4x8x8xbf16>, vector<4x8x32xbf16>, vector<4x8x32xf32> -> vector<4x8x32xf32>
    "tpu.trace_stop"() : () -> ()
    %cst_42 = arith.constant dense<0.000000e+00> : vector<8x32xf32>
    %88 = vector.multi_reduction <add>, %87, %cst_42 [0] : vector<4x8x32xf32> to vector<8x32xf32>
    %c0_43 = arith.constant 0 : index
    %c0_44 = arith.constant 0 : index
    %89 = vector.load %arg9[%c0_43, %c0_44] : memref<1x32xf32, #tpu.memory_space<vmem>>, vector<1x32xf32>
    %90 = vector.broadcast %89 : vector<1x32xf32> to vector<8x32xf32>
    %91 = arith.addf %88, %90 : vector<8x32xf32>
    %92 = arith.addf %6, %91 : vector<8x32xf32>
    %c0_45 = arith.constant 0 : index
    %c0_46 = arith.constant 0 : index
    %93 = vector.load %arg10[%c0_45, %c0_46] : memref<1x32xf32, #tpu.memory_space<vmem>>, vector<1x32xf32>
    %c0_47 = arith.constant 0 : index
    %c0_48 = arith.constant 0 : index
    %94 = vector.load %arg11[%c0_47, %c0_48] : memref<1x32xf32, #tpu.memory_space<vmem>>, vector<1x32xf32>
    %cst_49 = arith.constant dense<0.000000e+00> : vector<8xf32>
    %95 = vector.multi_reduction <add>, %92, %cst_49 [1] : vector<8x32xf32> to vector<8xf32>
    %96 = vector.shape_cast %95 : vector<8xf32> to vector<8x1xf32>
    %cst_50 = arith.constant 3.200000e+01 : f32
    %97 = vector.broadcast %cst_50 : f32 to vector<8x1xf32>
    %98 = arith.divf %96, %97 : vector<8x1xf32>
    %99 = vector.broadcast %98 : vector<8x1xf32> to vector<8x32xf32>
    %100 = arith.subf %92, %99 : vector<8x32xf32>
    %101 = arith.mulf %100, %100 : vector<8x32xf32>
    %cst_51 = arith.constant dense<0.000000e+00> : vector<8xf32>
    %102 = vector.multi_reduction <add>, %101, %cst_51 [1] : vector<8x32xf32> to vector<8xf32>
    %103 = vector.shape_cast %102 : vector<8xf32> to vector<8x1xf32>
    %cst_52 = arith.constant 3.200000e+01 : f32
    %104 = vector.broadcast %cst_52 : f32 to vector<8x1xf32>
    %105 = arith.divf %103, %104 : vector<8x1xf32>
    %106 = vector.broadcast %98 : vector<8x1xf32> to vector<8x32xf32>
    %107 = arith.subf %92, %106 : vector<8x32xf32>
    %cst_53 = arith.constant 9.99999974E-6 : f32
    %108 = vector.broadcast %cst_53 : f32 to vector<8x1xf32>
    %109 = arith.addf %105, %108 : vector<8x1xf32>
    %110 = math.rsqrt %109 : vector<8x1xf32>
    %111 = vector.broadcast %110 : vector<8x1xf32> to vector<8x32xf32>
    %112 = arith.mulf %107, %111 : vector<8x32xf32>
    %113 = vector.broadcast %93 : vector<1x32xf32> to vector<8x32xf32>
    %114 = arith.mulf %112, %113 : vector<8x32xf32>
    %115 = vector.broadcast %94 : vector<1x32xf32> to vector<8x32xf32>
    %116 = arith.addf %114, %115 : vector<8x32xf32>
    %117 = arith.truncf %116 : vector<8x32xf32> to vector<8x32xbf16>
    %c0_54 = arith.constant 0 : index
    %c0_55 = arith.constant 0 : index
    %118 = vector.load %arg12[%c0_54, %c0_55] : memref<32x128xbf16, #tpu.memory_space<vmem>>, vector<32x128xbf16>
    %cst_56 = arith.constant dense<0.000000e+00> : vector<8x128xf32>
    %119 = tpu.matmul %117, %118, %cst_56 {dimension_numbers = #tpu.dot_dimension_numbers<[1], [0], [0], [1], [0, 0, 1, 1], [], []>} : vector<8x32xbf16>, vector<32x128xbf16>, vector<8x128xf32> -> vector<8x128xf32>
    %c0_57 = arith.constant 0 : index
    %c0_58 = arith.constant 0 : index
    %120 = vector.load %arg13[%c0_57, %c0_58] : memref<1x128xf32, #tpu.memory_space<vmem>>, vector<1x128xf32>
    %121 = vector.broadcast %120 : vector<1x128xf32> to vector<8x128xf32>
    %122 = arith.addf %119, %121 : vector<8x128xf32>
    %123 = arith.mulf %122, %122 : vector<8x128xf32>
    %124 = arith.mulf %122, %123 : vector<8x128xf32>
    %cst_59 = arith.constant 4.471500e-02 : f32
    %125 = vector.broadcast %cst_59 : f32 to vector<8x128xf32>
    %126 = arith.mulf %125, %124 : vector<8x128xf32>
    %127 = arith.addf %122, %126 : vector<8x128xf32>
    %cst_60 = arith.constant 0.797884583 : f32
    %128 = vector.broadcast %cst_60 : f32 to vector<8x128xf32>
    %129 = arith.mulf %128, %127 : vector<8x128xf32>
    %130 = math.tanh %129 : vector<8x128xf32>
    %cst_61 = arith.constant 1.000000e+00 : f32
    %131 = vector.broadcast %cst_61 : f32 to vector<8x128xf32>
    %132 = arith.addf %131, %130 : vector<8x128xf32>
    %cst_62 = arith.constant 5.000000e-01 : f32
    %133 = vector.broadcast %cst_62 : f32 to vector<8x128xf32>
    %134 = arith.mulf %133, %132 : vector<8x128xf32>
    %135 = arith.mulf %122, %134 : vector<8x128xf32>
    %136 = arith.truncf %135 : vector<8x128xf32> to vector<8x128xbf16>
    %c0_63 = arith.constant 0 : index
    %c0_64 = arith.constant 0 : index
    %137 = vector.load %arg14[%c0_63, %c0_64] : memref<128x32xbf16, #tpu.memory_space<vmem>>, vector<128x32xbf16>
    %cst_65 = arith.constant dense<0.000000e+00> : vector<8x32xf32>
    %138 = tpu.matmul %136, %137, %cst_65 {dimension_numbers = #tpu.dot_dimension_numbers<[1], [0], [0], [1], [0, 0, 1, 1], [], []>} : vector<8x128xbf16>, vector<128x32xbf16>, vector<8x32xf32> -> vector<8x32xf32>
    %c0_66 = arith.constant 0 : index
    %c0_67 = arith.constant 0 : index
    %139 = vector.load %arg15[%c0_66, %c0_67] : memref<1x32xf32, #tpu.memory_space<vmem>>, vector<1x32xf32>
    %140 = vector.broadcast %139 : vector<1x32xf32> to vector<8x32xf32>
    %141 = arith.addf %138, %140 : vector<8x32xf32>
    %142 = arith.addf %92, %141 : vector<8x32xf32>
    %c0_68 = arith.constant 0 : index
    %c0_69 = arith.constant 0 : index
    %c0_70 = arith.constant 0 : index
    %143 = vector.load %arg16[%c0_68, %c0_69, %c0_70] : memref<1x8x32xf32, #tpu.memory_space<vmem>>, vector<1x8x32xf32>
    %144 = vector.shape_cast %143 : vector<1x8x32xf32> to vector<8x32xf32>
    %145 = vector.shape_cast %142 : vector<8x32xf32> to vector<1x8x32xf32>
    tpu.vector_store %arg16[%c0_68, %c0_69, %c0_70], %145 {strides = array<i32>} : memref<1x8x32xf32, #tpu.memory_space<vmem>>, vector<1x8x32xf32>,
    return
  }
  func.func @transform_0(%arg0: i32, %arg1: i32) -> (i32, i32, i32) {
    %c0_i32 = arith.constant 0 : i32
    %c0_i32_0 = arith.constant 0 : i32
    %c0_i32_1 = arith.constant 0 : i32
    return %arg0, %c0_i32, %c0_i32_0 : i32, i32, i32
  }
  func.func @transform_1(%arg0: i32, %arg1: i32) -> (i32, i32) {
    %c0_i32 = arith.constant 0 : i32
    %c0_i32_0 = arith.constant 0 : i32
    %c0_i32_1 = arith.constant 0 : i32
    return %c0_i32, %c0_i32_0 : i32, i32
  }
  func.func @transform_2(%arg0: i32, %arg1: i32) -> (i32, i32) {
    %c0_i32 = arith.constant 0 : i32
    %c0_i32_0 = arith.constant 0 : i32
    %c0_i32_1 = arith.constant 0 : i32
    return %c0_i32, %c0_i32_0 : i32, i32
  }
  func.func @transform_3(%arg0: i32, %arg1: i32) -> (i32, i32, i32) {
    %c0_i32 = arith.constant 0 : i32
    %c0_i32_0 = arith.constant 0 : i32
    %c0_i32_1 = arith.constant 0 : i32
    %c0_i32_2 = arith.constant 0 : i32
    return %c0_i32, %c0_i32_0, %c0_i32_1 : i32, i32, i32
  }
  func.func @transform_4(%arg0: i32, %arg1: i32) -> (i32, i32, i32) {
    %c0_i32 = arith.constant 0 : i32
    %c0_i32_0 = arith.constant 0 : i32
    %c0_i32_1 = arith.constant 0 : i32
    %c0_i32_2 = arith.constant 0 : i32
    return %c0_i32, %c0_i32_0, %c0_i32_1 : i32, i32, i32
  }
  func.func @transform_5(%arg0: i32, %arg1: i32) -> (i32, i32, i32) {
    %c0_i32 = arith.constant 0 : i32
    %c0_i32_0 = arith.constant 0 : i32
    %c0_i32_1 = arith.constant 0 : i32
    %c0_i32_2 = arith.constant 0 : i32
    return %c0_i32, %c0_i32_0, %c0_i32_1 : i32, i32, i32
  }
  func.func @transform_6(%arg0: i32, %arg1: i32) -> (i32, i32, i32) {
    %c0_i32 = arith.constant 0 : i32
    %c0_i32_0 = arith.constant 0 : i32
    %c0_i32_1 = arith.constant 0 : i32
    %c0_i32_2 = arith.constant 0 : i32
    return %c0_i32, %c0_i32_0, %c0_i32_1 : i32, i32, i32
  }
  func.func @transform_7(%arg0: i32, %arg1: i32) -> (i32, i32) {
    %c0_i32 = arith.constant 0 : i32
    %c0_i32_0 = arith.constant 0 : i32
    %c0_i32_1 = arith.constant 0 : i32
    return %c0_i32, %c0_i32_0 : i32, i32
  }
  func.func @transform_8(%arg0: i32, %arg1: i32) -> (i32, i32) {
    %c0_i32 = arith.constant 0 : i32
    %c0_i32_0 = arith.constant 0 : i32
    %c0_i32_1 = arith.constant 0 : i32
    return %c0_i32, %c0_i32_0 : i32, i32
  }
  func.func @transform_9(%arg0: i32, %arg1: i32) -> (i32, i32) {
    %c0_i32 = arith.constant 0 : i32
    %c0_i32_0 = arith.constant 0 : i32
    %c0_i32_1 = arith.constant 0 : i32
    return %c0_i32, %c0_i32_0 : i32, i32
  }
  func.func @transform_10(%arg0: i32, %arg1: i32) -> (i32, i32) {
    %c0_i32 = arith.constant 0 : i32
    %c0_i32_0 = arith.constant 0 : i32
    %c0_i32_1 = arith.constant 0 : i32
    return %c0_i32, %c0_i32_0 : i32, i32
  }
  func.func @transform_11(%arg0: i32, %arg1: i32) -> (i32, i32) {
    %c0_i32 = arith.constant 0 : i32
    %c0_i32_0 = arith.constant 0 : i32
    %c0_i32_1 = arith.constant 0 : i32
    return %c0_i32, %c0_i32_0 : i32, i32
  }
  func.func @transform_12(%arg0: i32, %arg1: i32) -> (i32, i32) {
    %c0_i32 = arith.constant 0 : i32
    %c0_i32_0 = arith.constant 0 : i32
    %c0_i32_1 = arith.constant 0 : i32
    return %c0_i32, %c0_i32_0 : i32, i32
  }
  func.func @transform_13(%arg0: i32, %arg1: i32) -> (i32, i32) {
    %c0_i32 = arith.constant 0 : i32
    %c0_i32_0 = arith.constant 0 : i32
    %c0_i32_1 = arith.constant 0 : i32
    return %c0_i32, %c0_i32_0 : i32, i32
  }
  func.func @transform_14(%arg0: i32, %arg1: i32) -> (i32, i32, i32) {
    %c0_i32 = arith.constant 0 : i32
    %c0_i32_0 = arith.constant 0 : i32
    return %arg0, %arg1, %c0_i32 : i32, i32, i32
  }
}

</mosaic_0001>

<bundles_post_ra>
// kernel: tpu_custom_call.1
= control target key start
LH: loop header
LB: loop body
LE: loop exit
PB: predicated region body
PF: predicated region fallthrough
CT: control target
= control target key end

     0   :  { %s3289_s0 = inlined_call_operand.vmem [shape: f32[2,16,32], index: 0, kind: input, shape index: {}]   ;;  %s3290_s1 = inlined_call_operand.vmem [shape: f32[1,32], index: 1, kind: input, shape index: {}]   ;;  %s3291_s2 = inlined_call_operand.vmem [shape: f32[1,32], index: 2, kind: input, shape index: {}]   ;;  %s3292_s3 = inlined_call_operand.vmem [shape: bf16[4,32,8], index: 3, kind: input, shape index: {}]   ;;  %s3293_s4 = inlined_call_operand.vmem [shape: bf16[4,32,8], index: 4, kind: input, shape index: {}]   ;;  %s3294_s5 = inlined_call_operand.vmem [shape: bf16[4,32,8], index: 5, kind: input, shape index: {}]   ;;  %s3295_s6 = inlined_call_operand.vmem [shape: bf16[4,8,32], index: 6, kind: input, shape index: {}]   ;;  %s3296_s7 = inlined_call_operand.vmem [shape: f32[1,32], index: 7, kind: input, shape index: {}]   ;;  %s3297_s8 = inlined_call_operand.vmem [shape: f32[1,32], index: 8, kind: input, shape index: {}]   ;;  %s3298_s9 = inlined_call_operand.vmem [shape: f32[1,32], index: 9, kind: input, shape index: {}]   ;;  %s3299_s10 = inlined_call_operand.vmem [shape: bf16[32,128], index: 10, kind: input, shape index: {}]   ;;  %s3300_s11 = inlined_call_operand.vmem [shape: f32[1,128], index: 11, kind: input, shape index: {}]   ;;  %s3301_s12 = inlined_call_operand.vmem [shape: bf16[128,32], index: 12, kind: input, shape index: {}]   ;;  %s3302_s13 = inlined_call_operand.vmem [shape: f32[1,32], index: 13, kind: input, shape index: {}]   ;;  %s3303_s14 = inlined_call_operand.hbm [shape: f32[2,16,32], index: 14, kind: output, shape index: {}]  }
   0x1   :  { %3312 = sst [smem:[#allocation11_spill]] %s3289_s0 }
   0x2   :  { %3313 = sst [smem:[#allocation12_spill]] %s3290_s1 }
   0x3   :  { %3314 = sst [smem:[#allocation13_spill]] %s3291_s2 }
   0x4   :  { %3315 = sst [smem:[#allocation14_spill]] %s3292_s3 }
   0x5   :  { %3316 = sst [smem:[#allocation15_spill]] %s3302_s13 }
   0x6   :  { %3317 = sst [smem:[#allocation16_spill]] %s3303_s14 }
   0x7   :  { %19 = vsyncpa [#allocation3], 0 }
   0x8   :  { %21 = vsyncpa [#allocation3 + $0x1], 0  ;;  %s2829_s29 = smov 0   ;;  %s2831_s30 = smov 0  }
   0x9   :  { %s2833_s15 = smov 0   ;;  %s2835_s16 = smov 0  }
   0xa   :  { %s2837_s17 = smov 0   ;;  %s2839_s18 = smov 0  }
   0xb   :  { %s2841_s19 = smov 0   ;;  %s2843_s20 = smov 0  }
   0xc LB: > { %3318 = sst [smem:[#allocation5_spill]] %s2721_s29  ;;  %s2175_s21 = sadd.s32 4294967295, %s2749_s20   ;;  %s2749_s20 = sphi %s2843_s20, %s27_s20   ;;  %s2745_s19 = sphi %s2841_s19, %s3342_s19   ;;  %s2741_s18 = sphi %s2839_s18, %s3336_s18   ;;  %s2737_s17 = sphi %s2837_s17, %s3341_s17   ;;  %s2733_s16 = sphi %s2835_s16, %s3335_s16   ;;  %s2729_s15 = sphi %s2833_s15, %s3340_s15   ;;  %s2725_s30 = sphi %s2831_s30, %s3339_s30   ;;  %s2721_s29 = sphi %s2829_s29, %s3338_s29  }
   0xd   : > { %3319 = sst [smem:[#allocation6_spill]] %s2741_s18  ;;  %s2176_s22 = sadd.s32 4294967294, %s2749_s20  }
   0xe   : > { %s36_s23 = sadd.s32 1, %s2741_s18  ;;  %s39_s24 = sadd.s32 1, %s2745_s19 }
   0xf   : > { %p37_p0 = scmp.ge.s32.totalorder %s36_s23, 2  ;;  %p357_p1 = scmp.ne.s32.totalorder %s2729_s15, %s2725_s30 }
  0x10   : > { %p358_p2 = scmp.eq.s32.totalorder %s2175_s21, 3  ;;  %p363_p5 = scmp.ne.s32.totalorder %s2725_s30, %s2721_s29 }
  0x11   : > { %s3344_s23 = smov (%p37_p0, %s36_s23), 0  ;;  %s3346_s24 = smov (!%p37_p0, %s39_s24), %s2745_s19 }
  0x12   : > { %3320 = sst [smem:[#allocation7_spill]] %s3344_s23  ;;  %s343_s25 = ssub.s32 %s2741_s18, %s3344_s23 }
  0x13   : > { %p2880_p3 = por %p358_p2, %p357_p1  ;;  %p41_p4 = scmp.ge.s32.totalorder %s3346_s24, 2 }
  0x14   : > { %p364_p6 = scmp.eq.s32.totalorder %s2176_s22, 3  ;;  %p2179_p7 = scmp.ge.s32.totalorder %s2749_s20, 1 }
  0x15   : > { %s3321_s26 = scalar_select %p2880_p3, 1, 0 }
  0x16   : > { %s3348_s24 = smov (%p41_p4, %s3346_s24), 0  ;;  %p2889_p8 = por %p364_p6, %p363_p5 }
  0x17   : > { %3322 = sst [smem:[#allocation8_spill]] %s3321_s26  ;;  %p429_p9 = scmp.lt.s32.totalorder %s2749_s20, 5 }
  0x18   : > { %3323 = sst [smem:[#allocation9_spill]] %s3348_s24  ;;  %s342_s28 = ssub.s32 %s2745_s19, %s3348_s24 }
  0x19   : > { %s3324_s27 = scalar_select %p2889_p8, 1, 0 }
  0x1a   : > { %s347_s21 = sadd.s32 1, %s2729_s15  ;;  %s344_s14 = sor.u32 %s343_s25, %s342_s28 }
  0x1b   : > { %3325 = sst [smem:[#allocation10_spill]] %s3324_s27  ;;  %p430_p10 = pnand %p2179_p7, %p429_p9 }
  0x1c   : > { %p345_p11 = scmp.eq.s32.totalorder %s344_s14, 0  ;;  %p475_p12 = scmp.lt.s32.totalorder (!%p430_p10), %s2737_s17, 1 }
  0x1d   : > { %433 = sbr.rel (%p430_p10) target bundleno = 2241 (0x8c1), region = 76  ;;  %s2183_s22 = sshll.u32 (!%p430_p10), %s2733_s16, 3 }
  0x1e   : > { %s2898_s23 = scalar_select %p345_p11, %s2729_s15, %s347_s21  }
  0x1f   : > { %s3326_s0 = sld [smem:[#allocation11_spill]] (!%p430_p10)  ;;  %s472_s13 = sand.u32 (!%p430_p10), 1, %s2725_s30  }
  0x20   : > { %s3327_s3 = sld [smem:[#allocation14_spill]] (!%p430_p10)  ;;  %s2180_s14 = sshll.u32 (!%p430_p10), %s472_s13, 3 }
  0x21   : > { %s3328_s1 = sld [smem:[#allocation12_spill]] (!%p430_p10)  ;;  %s474_s21 = scalar_lea.vmem (!%p430_p10), [#allocation2], %s2180_s14 }
  0x22   : > { %s476_s18 = scalar_select %p475_p12, %s2737_s17, 1  ;;  %vm488_vm0 = vcmask 261120   ;;  %v2751_v23 = vmov 0.0   ;;  %vm2752_vm1 = vmmov 0   ;;  %v2602_v46 = vld [vmem:[%s3293_s4 + $0x18] sm:$0xff]   ;;  %v2604_v51 = vld [vmem:[%s3293_s4 + $0x10] sm:$0xff]  }
  0x23   : > { %2328 = vmatprep.subr.bf16.mxu0 %v2751_v23  ;;  %2352 = vmatprep.subr.bf16.mxu1 %v2751_v23  ;;  %s3329_s2 = sld [smem:[#allocation13_spill]]  ;;  %v2606_v55 = vld [vmem:[%s3293_s4 + $0x38] sm:$0xff]   ;;  %v2608_v58 = vld [vmem:[%s3293_s4 + $0x30] sm:$0xff]   ;;  %v2609_v59 = vld [vmem:[%s3293_s4 + $0x8] sm:$0xff]   ;;  %vm1251_vm2 = vcmask 64512   ;;  %vm1436_vm3 = vcmask 130048  }
  0x24   : > { %s2255_s29 = sshll.u32 %s476_s18, 4  ;;  %2332 = vmatprep.mubr.msk.bf16.mxu0 %vm2752_vm1, %v2751_v23  ;;  %2356 = vmatprep.mubr.msk.bf16.mxu1 %vm2752_vm1, %v2751_v23  ;;  %v2610_v60 = vld [vmem:[%s3294_s5 + $0x18] sm:$0xff]   ;;  %v2611_v61 = vld [vmem:[%s3293_s4] sm:$0xff]   ;;  %v2612_v62 = vld [vmem:[%s3294_s5 + $0x10] sm:$0xff]   ;;  %vm1668_vm4 = vcmask 1043456   ;;  %s3330_s26 = sld [smem:[#allocation15_spill]] }
  0x25   : > { %s479_s27 = scalar_lea.vmem %s3326_s0, %s2255_s29  ;;  %v2613_v63 = vld [vmem:[%s3293_s4 + $0x28] sm:$0xff]   ;;  %s2251_s29 = sshll.u32 %s2737_s17, 1 }
  0x26   : > { %s484_s24 = scalar_lea.vmem %s479_s27, %s2183_s22  ;;  %v483_v0 = vld [vmem:[%s479_s27 + $0x8] sm:$0xff]  ;;  %v482_v1 = vld [vmem:[%s479_s27] sm:$0xff]  ;;  %v2598_v22 = vld [vmem:[%s3327_s3 + $0x38] sm:$0xff]   ;;  %s2097_s18 = sadd.s32 %s2733_s16, %s2251_s29 }
  0x27   : > { %v2906_v2 = vld [vmem:[%s484_s24] sm:$0xff]  ;;  %v492_v3 = vsel %vm488_vm0, %v483_v0, 0.0  ;;  %v489_v5 = vsel %vm488_vm0, %v482_v1, 0.0  ;;  %v2597_v21 = vld [vmem:[%s3327_s3 + $0x8] sm:$0xff]   ;;  %2353 = vmatpush3.bf16.msra.mxu1 %v2598_v22  ;;  %v2600_v25 = vld [vmem:[%s3327_s3 + $0x30] sm:$0xff]   ;;  %s2252_s28 = sshll.u32 %s2097_s18, 7 }
  0x28   : > { %v533_v4 = vsel %vm488_vm0, %v2906_v2, 0.0  ;;  %493 = vadd.xlane.f32.xlu1 %v492_v3  ;;  %2329 = vmatpush3.bf16.msra.mxu0 %v2597_v21  ;;  %v2599_v24 = vld [vmem:[%s3327_s3] sm:$0xff]   ;;  %v2601_v45 = vld [vmem:[%s3327_s3 + $0x18] sm:$0xff]   ;;  %v2603_v50 = vld [vmem:[%s3327_s3 + $0x10] sm:$0xff]   ;;  %s2101_s22 = sshll.u32 %s474_s21, 4  ;;  %s2086_s16 = scalar_lea.sflag [#allocation3], %s472_s13  ;;  %s3238_s22 = int_to_ptr.vmem [resolvable:$true] %s2101_s22 }
  0x29   : > { %534 = vadd.xlane.f32.xlu0 %v533_v4  ;;  %2330 = vmatprep.subr.bf16.mxu0 %v2751_v23  ;;  %v2184_v36 = vld [vmem:[%s3328_s1] ss:$0 sm:$0xff]  ;;  %v2605_v54 = vld [vmem:[%s3327_s3 + $0x28] sm:$0xff]   ;;  %v2616_v3 = vld [vmem:[%s3294_s5 + $0x30] sm:$0xff]   ;;  %s2657_s17 = scalar_lea.vmem %s3238_s22, 128  ;;  %s2753_s14 = smov [#allocation2]  }
  0x2a   : > { %2354 = vmatprep.subr.bf16.mxu1 %v2751_v23  ;;  %v2185_v38 = vld [vmem:[%s3329_s2] ss:$0 sm:$0xff]  ;;  %v2617_v4 = vld [vmem:[%s3294_s5 + $0x8] sm:$0xff]   ;;  %s3332_s2 = sld [smem:[#allocation16_spill]]  ;;  %p2658_p13 = scmp.ne.s32.totalorder %s3238_s22, %s2657_s17 }
  0x2b   : > { %2355 = vmatpush3.bf16.msra.mxu1 %v2600_v25  ;;  %v2607_v57 = vld [vmem:[%s3327_s3 + $0x20] sm:$0xff]   ;;  %s2661_s29 = sshll.u32 %s2753_s14, 4  ;;  %s2662_s29 = int_to_ptr.vmem [resolvable:$false] %s2661_s29 }
  0x2c   : > { %2331 = vmatpush3.bf16.msra.mxu0 %v2599_v24  ;;  %2368 = vmatprep.subr.bf16.mxu1 %v2751_v23  ;;  %p2659_p0 = pnand %p2658_p13, %p2880_p3  ;;  %s2663_s0 = scalar_lea.vmem %s2662_s29, 256 }
  0x2d   : > { %490 = vadd.xlane.f32.xlu0 %v489_v5  ;;  %2336 = vmatprep.subr.bf16.mxu0 %v2751_v23  ;;  %v2618_v5 = vld [vmem:[%s3294_s5] sm:$0xff]   ;;  %p2664_p2 = scmp.lt.s32.totalorder %s3238_s22, %s2662_s29  ;;  %p2665_p4 = scmp.lt.s32.totalorder %s2663_s0, %s2657_s17 }
  0x2e   : > { %p2660_p1 = pneg %p2659_p0 }
  0x2f   : > { %p2666_p5 = por %p2665_p4, %p2664_p2 }
  0x30   : > { %s3236_s3 = scalar_lea.hbm %s3332_s2, %s2252_s28 }
  0x31   : > { %p2667_p6 = pnand %p2666_p5, %p2660_p1 }
  0xb1   : > { %v494_v6 = vpop.xlane.xlu1 %493 }
  0xb2   : > { %v535_v7 = vpop.xlane.xlu0 %534  ;;  %v497_v8 = vmul.f32 0.03125, %v494_v6  ;;  %v2619_v6 = vld [vmem:[%s3294_s5 + $0x28] sm:$0xff]  }
  0xb3   : > { %v536_v9 = vmul.f32 0.03125, %v535_v7  ;;  %v2620_v7 = vld [vmem:[%s3294_s5 + $0x20] sm:$0xff]  }
  0xb4   : > { %v499_v10 = vsub.f32 %v483_v0, %v497_v8  ;;  %v2614_v0 = vld [vmem:[%s3294_s5 + $0x38] sm:$0xff]  }
  0xb5   : > { %v537_v11 = vsub.f32 %v2906_v2, %v536_v9 }
  0xb6   : > { %v491_v12 = vpop.xlane.xlu0 %490  ;;  %v501_v15 = vmul.f32 %v499_v10, %v499_v10 }
  0xb7   : > { %v496_v13 = vmul.f32 0.03125, %v491_v12  ;;  %v538_v14 = vmul.f32 %v537_v11, %v537_v11 }
  0xb8   : > { %v505_v18 = vsel %vm488_vm0, %v501_v15, 0.0 }
  0xb9   : > { %v498_v16 = vsub.f32 %v482_v1, %v496_v13  ;;  %v539_v17 = vsel %vm488_vm0, %v538_v14, 0.0  ;;  %v2615_v1 = vld [vmem:[%s3293_s4 + $0x20] sm:$0xff]  }
  0xba   : > { %540 = vadd.xlane.f32.xlu1 %v539_v17 }
  0xbb   : > { %v500_v19 = vmul.f32 %v498_v16, %v498_v16 }
  0xbd   : > { %v502_v20 = vsel %vm488_vm0, %v500_v19, 0.0 }
  0xbe   : > { %506 = vadd.xlane.f32.xlu1 %v505_v18  ;;  %503 = vadd.xlane.f32.xlu0 %v502_v20 }
 0x143   : > { %v541_v26 = vpop.xlane.xlu1 %540 }
 0x144   : > { %v542_v27 = vmul.f32 0.03125, %v541_v26 }
 0x146   : > { %v543_v28 = vadd.f32 1e-05, %v542_v27 }
 0x147   : > { %v507_v29 = vpop.xlane.xlu1 %506  ;;  %v504_v30 = vpop.xlane.xlu0 %503 }
 0x148   : > { %2631 = vrsqrt.f32 %v543_v28  ;;  %v509_v31 = vmul.f32 0.03125, %v507_v29  ;;  %v508_v32 = vmul.f32 0.03125, %v504_v30 }
 0x14a   : > { %v511_v33 = vadd.f32 1e-05, %v509_v31  ;;  %v510_v34 = vadd.f32 1e-05, %v508_v32 }
 0x14c   : > { %2633 = vrsqrt.f32 %v511_v33 }
 0x14d   : > { %2635 = vrsqrt.f32 %v510_v34 }
 0x155   : > { %v2632_v35 = vpop.eup %2631 }
 0x156   : > { %v545_v37 = vmul.f32 %v2632_v35, %v537_v11 }
 0x158   : > { %v546_v39 = vmul.f32 %v2184_v36, %v545_v37 }
 0x159   : > { %v2634_v40 = vpop.eup %2633 }
 0x15a   : > { %v2636_v41 = vpop.eup %2635  ;;  %v515_v42 = vmul.f32 %v2634_v40, %v499_v10  ;;  %v547_v43 = vadd.f32 %v2185_v38, %v546_v39 }
 0x15b   : > { %v514_v44 = vmul.f32 %v2636_v41, %v498_v16 }
 0x15c   : > { %v523_v47 = vmul.f32 %v2184_v36, %v515_v42  ;;  %v548_v48 = vpack.c.bf16 %v547_v43, %v547_v43 }
 0x15d   : > { %v522_v49 = vmul.f32 %v2184_v36, %v514_v44 }
 0x15e   : > { %2333 = vmatmul.mubr.msk.bf16.vlgmr.msra.gmra.mxu0 %vm488_vm0, %v548_v48  ;;  %2357 = vmatmul.mubr.msk.bf16.vlgmr.msra.gmra.mxu1 %vm488_vm0, %v548_v48  ;;  %v531_v53 = vadd.f32 %v2185_v38, %v523_v47 }
 0x15f   : > { %2337 = vmatpush3.bf16.msra.mxu0 %v2601_v45  ;;  %2369 = vmatpush3.bf16.msra.mxu1 %v2602_v46  ;;  %v530_v52 = vadd.f32 %v2185_v38, %v522_v49 }
 0x160   : > { %2338 = vmatprep.subr.bf16.mxu0 %v2751_v23  ;;  %2370 = vmatprep.subr.bf16.mxu1 %v2751_v23 }
 0x161   : > { %2340 = vmatprep.mubr.msk.bf16.mxu0 %vm2752_vm1, %v2751_v23  ;;  %2372 = vmatprep.mubr.msk.bf16.mxu1 %vm2752_vm1, %v2751_v23  ;;  %v2970_v56 = vpack.c.bf16 %v531_v53, %v530_v52 }
 0x163   : > { %2339 = vmatpush3.bf16.msra.mxu0 %v2603_v50  ;;  %2371 = vmatpush3.bf16.msra.mxu1 %v2604_v51 }
 0x164   : > { %2344 = vmatprep.subr.bf16.mxu0 %v2751_v23  ;;  %2384 = vmatprep.subr.bf16.mxu1 %v2751_v23 }
 0x166   : > { %2341 = vmatmul.mubr.msk.bf16.vlgmr.msra.gmra.mxu0 %vm488_vm0, %v548_v48  ;;  %2373 = vmatmul.mubr.msk.bf16.vlgmr.msra.gmra.mxu1 %vm488_vm0, %v2970_v56 }
 0x167   : > { %2345 = vmatpush3.bf16.msra.mxu0 %v2605_v54  ;;  %2385 = vmatpush3.bf16.msra.mxu1 %v2606_v55 }
 0x168   : > { %2346 = vmatprep.subr.bf16.mxu0 %v2751_v23  ;;  %2386 = vmatprep.subr.bf16.mxu1 %v2751_v23 }
 0x169   : > { %2348 = vmatprep.mubr.msk.bf16.mxu0 %vm2752_vm1, %v2751_v23  ;;  %2388 = vmatprep.mubr.msk.bf16.mxu1 %vm2752_vm1, %v2751_v23 }
 0x16b   : > { %2347 = vmatpush3.bf16.msra.mxu0 %v2607_v57  ;;  %2387 = vmatpush3.bf16.msra.mxu1 %v2608_v58 }
 0x16c   : > { %2360 = vmatprep.subr.bf16.mxu0 %v2751_v23  ;;  %2400 = vmatprep.subr.bf16.mxu1 %v2751_v23 }
 0x16e   : > { %2349 = vmatmul.mubr.msk.bf16.vlgmr.msra.gmra.mxu0 %vm488_vm0, %v548_v48  ;;  %2389 = vmatmul.mubr.msk.bf16.vlgmr.msra.gmra.mxu1 %vm488_vm0, %v2970_v56 }
 0x16f   : > { %2361 = vmatpush3.bf16.msra.mxu0 %v2609_v59  ;;  %2401 = vmatpush3.bf16.msra.mxu1 %v2610_v60 }
 0x170   : > { %2362 = vmatprep.subr.bf16.mxu0 %v2751_v23  ;;  %2402 = vmatprep.subr.bf16.mxu1 %v2751_v23 }
 0x171   : > { %2364 = vmatprep.mubr.msk.bf16.mxu0 %vm2752_vm1, %v2751_v23  ;;  %2404 = vmatprep.mubr.msk.bf16.mxu1 %vm2752_vm1, %v2751_v23 }
 0x173   : > { %2363 = vmatpush3.bf16.msra.mxu0 %v2611_v61  ;;  %2403 = vmatpush3.bf16.msra.mxu1 %v2612_v62 }
 0x174   : > { %2376 = vmatprep.subr.bf16.mxu0 %v2751_v23  ;;  %2416 = vmatprep.subr.bf16.mxu1 %v2751_v23 }
 0x176   : > { %2365 = vmatmul.mubr.msk.bf16.vlgmr.msra.gmra.mxu0 %vm488_vm0, %v2970_v56  ;;  %2405 = vmatmul.mubr.msk.bf16.vlgmr.msra.gmra.mxu1 %vm488_vm0, %v2970_v56 }
 0x177   : > { %2377 = vmatpush3.bf16.msra.mxu0 %v2613_v63  ;;  %2417 = vmatpush3.bf16.msra.mxu1 %v2614_v0 }
 0x178   : > { %2378 = vmatprep.subr.bf16.mxu0 %v2751_v23  ;;  %2418 = vmatprep.subr.bf16.mxu1 %v2751_v23 }
 0x179   : > { %2380 = vmatprep.mubr.msk.bf16.mxu0 %vm2752_vm1, %v2751_v23  ;;  %2420 = vmatprep.mubr.msk.bf16.mxu1 %vm2752_vm1, %v2751_v23 }
 0x17b   : > { %2379 = vmatpush3.bf16.msra.mxu0 %v2615_v1  ;;  %2419 = vmatpush3.bf16.msra.mxu1 %v2616_v3 }
 0x17c   : > { %2392 = vmatprep.subr.bf16.mxu0 %v2751_v23  ;;  %2430 = vmatprep.subr.bf16.mxu1 %v2751_v23 }
 0x17e   : > { %2381 = vmatmul.mubr.msk.bf16.vlgmr.msra.gmra.mxu0 %vm488_vm0, %v2970_v56  ;;  %2421 = vmatmul.mubr.msk.bf16.vlgmr.msra.gmra.mxu1 %vm488_vm0, %v2970_v56 }
 0x17f   : > { %2393 = vmatpush3.bf16.msra.mxu0 %v2617_v4  ;;  %2396 = vmatprep.mubr.msk.bf16.mxu0 %vm2752_vm1, %v2751_v23 }
 0x180   : > { %2394 = vmatprep.subr.bf16.mxu0 %v2751_v23  ;;  %2432 = vmatprep.mubr.msk.bf16.mxu1 %vm2752_vm1, %v2751_v23 }
 0x183   : > { %2395 = vmatpush3.bf16.msra.mxu0 %v2618_v5 }
 0x184   : > { %2408 = vmatprep.subr.bf16.mxu0 %v2751_v23 }
 0x186   : > { %2397 = vmatmul.mubr.msk.bf16.vlgmr.msra.gmra.mxu0 %vm488_vm0, %v2970_v56 }
 0x187   : > { %2409 = vmatpush3.bf16.msra.mxu0 %v2619_v6  ;;  %2412 = vmatprep.mubr.msk.bf16.mxu0 %vm2752_vm1, %v2751_v23 }
 0x188   : > { %2410 = vmatprep.subr.bf16.mxu0 %v2751_v23 }
 0x18b   : > { %2411 = vmatpush3.bf16.msra.mxu0 %v2620_v7 }
 0x18c   : > { %2424 = vmatprep.subr.bf16.mxu0 %v2751_v23 }
 0x18e   : > { %2413 = vmatmul.mubr.msk.bf16.vlgmr.msra.gmra.mxu0 %vm488_vm0, %v2970_v56 }
 0x18f   : > { %2426 = vmatprep.mubr.msk.bf16.mxu0 %vm2752_vm1, %v2751_v23 }
 0x21e   : > { %v614_v8 = vpop.f32.mrf.mxu0  ;;  %v770_v9 = vpop.f32.mrf.mxu1 }
 0x21f   : > { %v1238_v41 = vmul.f32 0.35355338, %v770_v9  ;;  %v1235_v54 = vmul.f32 0.35355338, %v614_v8 }
 0x220   : > { %v2334_v10 = vpop.f32.mrf.mxu0  ;;  %v2358_v11 = vpop.f32.mrf.mxu1 }
 0x221   : > { %v1242_v46 = vpack.c.bf16 %v1238_v41, %v1238_v41  ;;  %v1239_v59 = vpack.c.bf16 %v1235_v54, %v1235_v54 }
 0x222   : > { %v617_v12 = vpop.f32.mrf.mxu0  ;;  %v773_v13 = vpop.f32.mrf.mxu1 }
 0x224   : > { %v2335_v14 = vpop.f32.mrf.mxu0  ;;  %v2359_v15 = vpop.f32.mrf.mxu1 }
 0x226   : > { %v666_v16 = vpop.f32.mrf.mxu0  ;;  %v894_v17 = vpop.f32.mrf.mxu1 }
 0x227   : > { %v1236_v29 = vmul.f32 0.35355338, %v666_v16 }
 0x228   : > { %v2342_v18 = vpop.f32.mrf.mxu0  ;;  %v2374_v19 = vpop.f32.mrf.mxu1 }
 0x229   : > { %v1240_v34 = vpack.c.bf16 %v1236_v29, %v1236_v29 }
 0x22a   : > { %v669_v20 = vpop.f32.mrf.mxu0  ;;  %v897_v21 = vpop.f32.mrf.mxu1 }
 0x22b   : > { %v1244_v22 = vpack.c.bf16 %v897_v21, %v894_v17 }
 0x22c   : > { %v2343_v24 = vpop.f32.mrf.mxu0  ;;  %v2375_v25 = vpop.f32.mrf.mxu1 }
 0x22d   : > { %v1302_v26 = vsel %vm1251_vm2, %v1244_v22, 0 }
 0x22e   : > { %v718_v27 = vpop.f32.mrf.mxu0  ;;  %v1000_v28 = vpop.f32.mrf.mxu1  ;;  %2431 = vmatpush3.bf16.xpose.msra.mxu1 %v1302_v26 }
 0x22f   : > { %2442 = vmatprep.subr.bf16.mxu1 %v2751_v23  ;;  %v1237_v3 = vmul.f32 0.35355338, %v718_v27 }
 0x230   : > { %v2350_v30 = vpop.f32.mrf.mxu0  ;;  %v2390_v31 = vpop.f32.mrf.mxu1 }
 0x231   : > { %v1241_v6 = vpack.c.bf16 %v1237_v3, %v1237_v3 }
 0x232   : > { %v721_v32 = vpop.f32.mrf.mxu0  ;;  %v1003_v33 = vpop.f32.mrf.mxu1 }
 0x233   : > { %v1246_v35 = vpack.c.bf16 %v1003_v33, %v1000_v28 }
 0x234   : > { %v2351_v36 = vpop.f32.mrf.mxu0  ;;  %v2391_v37 = vpop.f32.mrf.mxu1 }
 0x235   : > { %v1394_v38 = vsel %vm1251_vm2, %v1246_v35, 0  ;;  %2433 = vmatmul.mubr.msk.bf16.vlgmr.msra.gmra.mxu1 %vm1251_vm2, %v1240_v34 }
 0x236   : > { %v841_v39 = vpop.f32.mrf.mxu0  ;;  %v1122_v40 = vpop.f32.mrf.mxu1  ;;  %2443 = vmatpush3.bf16.xpose.msra.mxu1 %v1394_v38  ;;  %2444 = vmatprep.mubr.msk.bf16.mxu1 %vm2752_vm1, %v2751_v23 }
 0x237   : > { %2454 = vmatprep.subr.bf16.mxu1 %v2751_v23 }
 0x238   : > { %v2366_v42 = vpop.f32.mrf.mxu0  ;;  %v2406_v43 = vpop.f32.mrf.mxu1 }
 0x23a   : > { %v844_v44 = vpop.f32.mrf.mxu0  ;;  %v1125_v45 = vpop.f32.mrf.mxu1 }
 0x23b   : > { %v1243_v47 = vpack.c.bf16 %v844_v44, %v841_v39  ;;  %v1248_v48 = vpack.c.bf16 %v1125_v45, %v1122_v40 }
 0x23c   : > { %v2367_v49 = vpop.f32.mrf.mxu0  ;;  %v2407_v50 = vpop.f32.mrf.mxu1 }
 0x23d   : > { %v1256_v51 = vsel %vm1251_vm2, %v1243_v47, 0  ;;  %2445 = vmatmul.mubr.msk.bf16.vlgmr.msra.gmra.mxu1 %vm1251_vm2, %v1242_v46 }
 0x23e   : > { %v947_v52 = vpop.f32.mrf.mxu0  ;;  %v3079_v53 = vpop.f32.mrf.mxu1  ;;  %2425 = vmatpush3.bf16.xpose.msra.mxu0 %v1256_v51  ;;  %2455 = vmatpush3.bf16.msra.mxu1 %v1248_v48 }
 0x23f   : > { %2436 = vmatprep.subr.bf16.mxu0 %v2751_v23  ;;  %2456 = vmatprep.mubr.msk.bf16.mxu1 %vm2752_vm1, %v2751_v23 }
 0x240   : > { %v2382_v55 = vpop.f32.mrf.mxu0  ;;  %v2422_v56 = vpop.f32.mrf.mxu1  ;;  %2466 = vmatprep.subr.bf16.mxu1 %v2751_v23 }
 0x242   : > { %v950_v57 = vpop.f32.mrf.mxu0  ;;  %v3085_v58 = vpop.f32.mrf.mxu1 }
 0x243   : > { %v1245_v60 = vpack.c.bf16 %v950_v57, %v947_v52  ;;  %v1250_v61 = vpack.c.bf16 %v3085_v58, %v3079_v53 }
 0x244   : > { %v2383_v62 = vpop.f32.mrf.mxu0  ;;  %v2423_v63 = vpop.f32.mrf.mxu1 }
 0x245   : > { %v1348_v0 = vsel %vm1251_vm2, %v1245_v60, 0  ;;  %2427 = vmatmul.mubr.msk.bf16.vlgmr.msra.gmra.mxu0 %vm1251_vm2, %v1239_v59 }
 0x246   : > { %v1069_v1 = vpop.f32.mrf.mxu0  ;;  %2437 = vmatpush3.bf16.xpose.msra.mxu0 %v1348_v0  ;;  %2438 = vmatprep.mubr.msk.bf16.mxu0 %vm2752_vm1, %v2751_v23 }
 0x247   : > { %2448 = vmatprep.subr.bf16.mxu0 %v2751_v23 }
 0x248   : > { %v2398_v4 = vpop.f32.mrf.mxu0 }
 0x24a   : > { %v1072_v5 = vpop.f32.mrf.mxu0 }
 0x24b   : > { %v1247_v7 = vpack.c.bf16 %v1072_v5, %v1069_v1 }
 0x24c   : > { %v2399_v8 = vpop.f32.mrf.mxu0 }
 0x24d   : > { %2439 = vmatmul.mubr.msk.bf16.vlgmr.msra.gmra.mxu0 %vm1251_vm2, %v1241_v6  ;;  %v1662_v8 = vld [vmem:[%s3295_s6 + $0x4] sm:$0xf] }
 0x24e   : > { %v3095_v9 = vpop.f32.mrf.mxu0  ;;  %2449 = vmatpush3.bf16.msra.mxu0 %v1247_v7  ;;  %2450 = vmatprep.mubr.msk.bf16.mxu0 %vm2752_vm1, %v2751_v23 }
 0x24f   : > { %2460 = vmatprep.subr.bf16.mxu0 %v2751_v23 }
 0x250   : > { %v2414_v10 = vpop.f32.mrf.mxu0 }
 0x251   : > { %v1661_v10 = vld [vmem:[%s3295_s6] sm:$0xf] }
 0x252   : > { %v3100_v11 = vpop.f32.mrf.mxu0 }
 0x253   : > { %v1249_v12 = vpack.c.bf16 %v3100_v11, %v3095_v9  ;;  %v1716_v9 = vsel %vm1668_vm4, %v1662_v8, 0  ;;  %v1670_v11 = vsel %vm1668_vm4, %v1661_v10, 0 }
 0x254   : > { %v2415_v13 = vpop.f32.mrf.mxu0 }
 0x2f5   : > { %v1338_v14 = vpop.f32.mrf.mxu1 }
 0x2f6   : > { %v1440_v15 = vsel %vm1436_vm3, %v1338_v14, -inf }
 0x2f7   : > { %1441 = vmax.xlane.f32.xlu1 %v1440_v15  ;;  %v2434_v16 = vpop.f32.mrf.mxu1 }
 0x2f9   : > { %v1341_v17 = vpop.f32.mrf.mxu1 }
 0x2fb   : > { %v2435_v18 = vpop.f32.mrf.mxu1 }
 0x2fd   : > { %v1430_v19 = vpop.f32.mrf.mxu1 }
 0x2fe   : > { %v1446_v20 = vsel %vm1436_vm3, %v1430_v19, -inf }
 0x2ff   : > { %1447 = vmax.xlane.f32.xlu1 %v1446_v20  ;;  %v2446_v21 = vpop.f32.mrf.mxu1 }
 0x301   : > { %v1433_v22 = vpop.f32.mrf.mxu1 }
 0x303   : > { %v2447_v24 = vpop.f32.mrf.mxu1 }
 0x305   : > { %v1292_v25 = vpop.f32.mrf.mxu0 }
 0x306   : > { %v1437_v26 = vsel %vm1436_vm3, %v1292_v25, -inf }
 0x307   : > { %1438 = vmax.xlane.f32.xlu0 %v1437_v26  ;;  %v2428_v27 = vpop.f32.mrf.mxu0 }
 0x309   : > { %v1295_v28 = vpop.f32.mrf.mxu0 }
 0x30b   : > { %v2429_v29 = vpop.f32.mrf.mxu0 }
 0x30d   : > { %v1384_v30 = vpop.f32.mrf.mxu0 }
 0x30e   : > { %v1443_v31 = vsel %vm1436_vm3, %v1384_v30, -inf }
 0x30f   : > { %1444 = vmax.xlane.f32.xlu0 %v1443_v31  ;;  %v2440_v32 = vpop.f32.mrf.mxu0 }
 0x311   : > { %v1387_v33 = vpop.f32.mrf.mxu0 }
 0x313   : > { %v2441_v34 = vpop.f32.mrf.mxu0 }
 0x380   : > { %v1442_v35 = vpop.xlane.xlu1 %1441 }
 0x381   : > { %v1450_v36 = vsub.f32 %v1338_v14, %v1442_v35 }
 0x383   : > { %v1455_v37 = vmul.f32 1.442695, %v1450_v36 }
 0x385   : > { %2637 = vpow2.f32 %v1455_v37 }
 0x388   : > { %v1448_v38 = vpop.xlane.xlu1 %1447 }
 0x389   : > { %v1452_v39 = vsub.f32 %v1430_v19, %v1448_v38 }
 0x38b   : > { %v1459_v40 = vmul.f32 1.442695, %v1452_v39 }
 0x38d   : > { %2639 = vpow2.f32 %v1459_v40 }
 0x390   : > { %v1439_v41 = vpop.xlane.xlu0 %1438 }
 0x391   : > { %v1449_v42 = vsub.f32 %v1292_v25, %v1439_v41  ;;  %v1663_v25 = vld [vmem:[%s3295_s6 + $0x8] sm:$0xf] }
 0x392   : > { %v2638_v43 = vpop.eup %2637  ;;  %v1762_v28 = vsel %vm1668_vm4, %v1663_v25, 0  ;;  %v2630_v25 = vld [vmem:[%s3301_s12] sm:$0xff]  }
 0x393   : > { %v1453_v44 = vmul.f32 1.442695, %v1449_v42  ;;  %v1464_v45 = vsel %vm1436_vm3, %v2638_v43, 0.0 }
 0x394   : > { %1465 = vadd.xlane.f32.xlu1 %v1464_v45 }
 0x395   : > { %2641 = vpow2.f32 %v1453_v44 }
 0x398   : > { %v1445_v46 = vpop.xlane.xlu0 %1444 }
 0x399   : > { %v1451_v47 = vsub.f32 %v1384_v30, %v1445_v46 }
 0x39a   : > { %v2640_v48 = vpop.eup %2639 }
 0x39b   : > { %v1457_v49 = vmul.f32 1.442695, %v1451_v47  ;;  %v1470_v50 = vsel %vm1436_vm3, %v2640_v48, 0.0 }
 0x39c   : > { %1471 = vadd.xlane.f32.xlu1 %v1470_v50 }
 0x39d   : > { %2643 = vpow2.f32 %v1457_v49 }
 0x3a2   : > { %v2642_v51 = vpop.eup %2641 }
 0x3a3   : > { %v1461_v52 = vsel %vm1436_vm3, %v2642_v51, 0.0 }
 0x3a4   : > { %1462 = vadd.xlane.f32.xlu0 %v1461_v52 }
 0x3aa   : > { %v2644_v54 = vpop.eup %2643 }
 0x3ab   : > { %v1467_v55 = vsel %vm1436_vm3, %v2644_v54, 0.0 }
 0x3ac   : > { %1468 = vadd.xlane.f32.xlu0 %v1467_v55 }
 0x41d   : > { %v1466_v56 = vpop.xlane.xlu1 %1465 }
 0x41e   : > { %2645 = vrcp.f32 %v1466_v56 }
 0x425   : > { %v1472_v57 = vpop.xlane.xlu1 %1471 }
 0x426   : > { %2647 = vrcp.f32 %v1472_v57 }
 0x42b   : > { %v2646_v59 = vpop.eup %2645 }
 0x42c   : > { %v1478_v60 = vmul.f32 %v2646_v59, %v2638_v43  ;;  %v2234_v59 = vld [vmem:[%s3296_s7] ss:$0 sm:$0xff] }
 0x42d   : > { %v1463_v62 = vpop.xlane.xlu0 %1462 }
 0x42e   : > { %2649 = vrcp.f32 %v1463_v62  ;;  %v1482_v63 = vpack.c.bf16 %v1478_v60, %v1478_v60 }
 0x430   : > { %2457 = vmatmul.mubr.msk.bf16.vlgmr.msra.gmra.mxu1 %vm1436_vm3, %v1482_v63 }
 0x431   : > { %2467 = vmatpush3.bf16.msra.mxu1 %v1250_v61  ;;  %2468 = vmatprep.mubr.msk.bf16.mxu1 %vm2752_vm1, %v2751_v23 }
 0x432   : > { %2478 = vmatprep.subr.bf16.mxu1 %v2751_v23 }
 0x433   : > { %v2648_v0 = vpop.eup %2647 }
 0x434   : > { %v1480_v1 = vmul.f32 %v2648_v0, %v2640_v48 }
 0x435   : > { %v1469_v3 = vpop.xlane.xlu0 %1468 }
 0x436   : > { %2651 = vrcp.f32 %v1469_v3  ;;  %v1484_v4 = vpack.c.bf16 %v1480_v1, %v1480_v1 }
 0x438   : > { %2469 = vmatmul.mubr.msk.bf16.vlgmr.msra.gmra.mxu1 %vm1436_vm3, %v1484_v4 }
 0x439   : > { %2480 = vmatprep.mubr.msk.bf16.mxu1 %vm2752_vm1, %v2751_v23  ;;  %2479 = vmatpush3.bf16.msra.mxu1 %v1716_v9 }
 0x43a   : > { %2490 = vmatprep.subr.bf16.mxu1 %v2751_v23 }
 0x43b   : > { %v2650_v5 = vpop.eup %2649 }
 0x43c   : > { %v1477_v6 = vmul.f32 %v2650_v5, %v2642_v51 }
 0x43e   : > { %v1481_v7 = vpack.c.bf16 %v1477_v6, %v1477_v6 }
 0x440   : > { %2451 = vmatmul.mubr.msk.bf16.vlgmr.msra.gmra.mxu0 %vm1436_vm3, %v1481_v7 }
 0x441   : > { %2461 = vmatpush3.bf16.msra.mxu0 %v1249_v12  ;;  %2462 = vmatprep.mubr.msk.bf16.mxu0 %vm2752_vm1, %v2751_v23  ;;  %v1664_v12 = vld [vmem:[%s3295_s6 + $0xc] sm:$0xf] }
 0x442   : > { %2472 = vmatprep.subr.bf16.mxu0 %v2751_v23  ;;  %v1808_v15 = vsel %vm1668_vm4, %v1664_v12, 0 }
 0x443   : > { %v2652_v53 = vpop.eup %2651 }
 0x444   : > { %v1479_v58 = vmul.f32 %v2652_v53, %v2644_v54 }
 0x446   : > { %v1483_v61 = vpack.c.bf16 %v1479_v58, %v1479_v58  ;;  %v2621_v58 = vld [vmem:[%s3299_s10 + $0x8] sm:$0xff]  }
 0x448   : > { %2463 = vmatmul.mubr.msk.bf16.vlgmr.msra.gmra.mxu0 %vm1436_vm3, %v1483_v61 }
 0x449   : > { %2474 = vmatprep.mubr.msk.bf16.mxu0 %vm2752_vm1, %v2751_v23  ;;  %2473 = vmatpush3.bf16.msra.mxu0 %v1670_v11  ;;  %v2235_v11 = vld [vmem:[%s3297_s8] ss:$0 sm:$0xff] }
 0x44a   : > { %2484 = vmatprep.subr.bf16.mxu0 %v2751_v23 }
 0x4f0   : > { %v1565_v13 = vpop.f32.mrf.mxu1 }
 0x4f1   : > { %v1658_v14 = vpack.c.bf16 %v1565_v13, %v1565_v13  ;;  %v2236_v13 = vld [vmem:[%s3298_s9] ss:$0 sm:$0xff] }
 0x4f2   : > { %v2458_v16 = vpop.f32.mrf.mxu1 }
 0x4f3   : > { %2481 = vmatmul.mubr.msk.bf16.vlgmr.msra.gmra.mxu1 %vm1251_vm2, %v1658_v14 }
 0x4f4   : > { %v1568_v17 = vpop.f32.mrf.mxu1  ;;  %2491 = vmatpush3.bf16.msra.mxu1 %v1808_v15  ;;  %2492 = vmatprep.mubr.msk.bf16.mxu1 %vm2752_vm1, %v2751_v23 }
 0x4f5   : > { %2504 = vmatprep.subr.bf16.mxu1 %v2751_v23  ;;  %v2623_v17 = vld [vmem:[%s3301_s12 + $0x38] sm:$0xff]  }
 0x4f6   : > { %v2459_v18 = vpop.f32.mrf.mxu1 }
 0x4f7   : > { %v2624_v18 = vld [vmem:[%s3301_s12 + $0x30] sm:$0xff]  }
 0x4f8   : > { %v1651_v19 = vpop.f32.mrf.mxu1 }
 0x4f9   : > { %v1660_v20 = vpack.c.bf16 %v1651_v19, %v1651_v19  ;;  %v2625_v19 = vld [vmem:[%s3301_s12 + $0x28] sm:$0xff]  }
 0x4fa   : > { %v2470_v21 = vpop.f32.mrf.mxu1 }
 0x4fb   : > { %2493 = vmatmul.mubr.msk.bf16.vlgmr.msra.gmra.mxu1 %vm1251_vm2, %v1660_v20  ;;  %v2626_v20 = vld [vmem:[%s3301_s12 + $0x20] sm:$0xff]   ;;  %v2627_v21 = vld [vmem:[%s3301_s12 + $0x18] sm:$0xff]  }
 0x4fc   : > { %v1654_v22 = vpop.f32.mrf.mxu1  ;;  %2520 = vmatprep.mubr.msk.bf16.mxu1 %vm2752_vm1, %v2751_v23  ;;  %2505 = vmatpush3.bf16.msra.mxu1 %v2623_v17 }
 0x4fd   : > { %2506 = vmatprep.subr.bf16.mxu1 %v2751_v23  ;;  %v2628_v22 = vld [vmem:[%s3301_s12 + $0x10] sm:$0xff]  }
 0x4fe   : > { %v2471_v24 = vpop.f32.mrf.mxu1 }
 0x4ff   : > { %v2629_v24 = vld [vmem:[%s3301_s12 + $0x8] sm:$0xff]  }
 0x500   : > { %v1522_v26 = vpop.f32.mrf.mxu0  ;;  %2507 = vmatpush3.bf16.msra.mxu1 %v2624_v18 }
 0x501   : > { %v1657_v27 = vpack.c.bf16 %v1522_v26, %v1522_v26  ;;  %2508 = vmatprep.subr.bf16.mxu1 %v2751_v23  ;;  %v2237_v26 = vld [vmem:[%s3300_s11] ss:$0 sm:$0xff] }
 0x502   : > { %v2452_v29 = vpop.f32.mrf.mxu0 }
 0x503   : > { %2475 = vmatmul.mubr.msk.bf16.vlgmr.msra.gmra.mxu0 %vm1251_vm2, %v1657_v27 }
 0x504   : > { %v1525_v30 = vpop.f32.mrf.mxu0  ;;  %2485 = vmatpush3.bf16.msra.mxu0 %v1762_v28  ;;  %2486 = vmatprep.mubr.msk.bf16.mxu0 %vm2752_vm1, %v2751_v23 }
 0x505   : > { %2496 = vmatprep.subr.bf16.mxu0 %v2751_v23  ;;  %2509 = vmatpush3.bf16.msra.mxu1 %v2625_v19 }
 0x506   : > { %v2453_v31 = vpop.f32.mrf.mxu0  ;;  %2510 = vmatprep.subr.bf16.mxu1 %v2751_v23 }
 0x508   : > { %v1608_v32 = vpop.f32.mrf.mxu0 }
 0x509   : > { %v1659_v33 = vpack.c.bf16 %v1608_v32, %v1608_v32  ;;  %2511 = vmatpush3.bf16.msra.mxu1 %v2626_v20 }
 0x50a   : > { %v2464_v34 = vpop.f32.mrf.mxu0  ;;  %2512 = vmatprep.subr.bf16.mxu1 %v2751_v23 }
 0x50b   : > { %2487 = vmatmul.mubr.msk.bf16.vlgmr.msra.gmra.mxu0 %vm1251_vm2, %v1659_v33 }
 0x50c   : > { %v1611_v35 = vpop.f32.mrf.mxu0  ;;  %2500 = vmatprep.mubr.msk.bf16.mxu0 %vm2752_vm1, %v2751_v23  ;;  %2497 = vmatpush3.bf16.msra.mxu0 %v2621_v58 }
 0x50d   : > { %2498 = vmatprep.subr.bf16.mxu0 %v2751_v23  ;;  %2513 = vmatpush3.bf16.msra.mxu1 %v2627_v21 }
 0x50e   : > { %v2465_v36 = vpop.f32.mrf.mxu0  ;;  %2514 = vmatprep.subr.bf16.mxu1 %v2751_v23 }
 0x511   : > { %2515 = vmatpush3.bf16.msra.mxu1 %v2628_v22 }
 0x512   : > { %2516 = vmatprep.subr.bf16.mxu1 %v2751_v23 }
 0x515   : > { %2517 = vmatpush3.bf16.msra.mxu1 %v2629_v24 }
 0x516   : > { %2518 = vmatprep.subr.bf16.mxu1 %v2751_v23 }
 0x519   : > { %2519 = vmatpush3.bf16.msra.mxu1 %v2630_v25 }
 0x5b3   : > { %v1752_v37 = vpop.f32.mrf.mxu1 }
 0x5b4   : > { %v1851_v50 = vsel %vm488_vm0, %v1752_v37, 0.0 }
 0x5b5   : > { %v2482_v38 = vpop.f32.mrf.mxu1 }
 0x5b7   : > { %v1755_v39 = vpop.f32.mrf.mxu1 }
 0x5b9   : > { %v2483_v40 = vpop.f32.mrf.mxu1 }
 0x5bb   : > { %v1844_v41 = vpop.f32.mrf.mxu1 }
 0x5bc   : > { %v1855_v57 = vsel %vm488_vm0, %v1844_v41, 0.0  ;;  %v2241_v41 = vld [vmem:[%s3330_s26] ss:$0 sm:$0xff] }
 0x5bd   : > { %v2494_v42 = vpop.f32.mrf.mxu1 }
 0x5bf   : > { %v1847_v43 = vpop.f32.mrf.mxu1 }
 0x5c1   : > { %v2495_v44 = vpop.f32.mrf.mxu1 }
 0x5c3   : > { %v1706_v45 = vpop.f32.mrf.mxu0 }
 0x5c4   : > { %v1850_v48 = vsel %vm488_vm0, %v1706_v45, 0.0 }
 0x5c5   : > { %v2476_v46 = vpop.f32.mrf.mxu0  ;;  %v1852_v51 = vadd.f32 %v1851_v50, %v1850_v48 }
 0x5c7   : > { %v1709_v47 = vpop.f32.mrf.mxu0 }
 0x5c9   : > { %v2477_v49 = vpop.f32.mrf.mxu0 }
 0x5cb   : > { %v1798_v52 = vpop.f32.mrf.mxu0 }
 0x5cc   : > { %v1853_v54 = vsel %vm488_vm0, %v1798_v52, 0.0 }
 0x5cd   : > { %v1854_v55 = vadd.f32 %v1853_v54, %v1852_v51  ;;  %v2488_v56 = vpop.f32.mrf.mxu0 }
 0x5cf   : > { %v1856_v60 = vadd.f32 %v1855_v57, %v1854_v55  ;;  %v1801_v62 = vpop.f32.mrf.mxu0 }
 0x5d1   : > { %v1864_v63 = vadd.f32 %v2234_v59, %v1856_v60  ;;  %v2489_v0 = vpop.f32.mrf.mxu0 }
 0x5d3   : > { %v3172_v1 = vadd.f32 %v1864_v63, %v2906_v2  ;;  %v2622_v2 = vld [vmem:[%s3299_s10] sm:$0xff]  }
 0x5d4   : > { %2499 = vmatpush3.bf16.msra.mxu0 %v2622_v2 }
 0x5d5   : > { %v1868_v3 = vsel %vm488_vm0, %v3172_v1, 0.0 }
 0x5d6   : > { %1869 = vadd.xlane.f32.xlu0 %v1868_v3 }
 0x65f   : > { %v1870_v4 = vpop.xlane.xlu0 %1869 }
 0x660   : > { %v1871_v5 = vmul.f32 0.03125, %v1870_v4 }
 0x662   : > { %v1872_v6 = vsub.f32 %v3172_v1, %v1871_v5 }
 0x664   : > { %v1873_v7 = vmul.f32 %v1872_v6, %v1872_v6 }
 0x666   : > { %v1874_v53 = vsel %vm488_vm0, %v1873_v7, 0.0 }
 0x667   : > { %1875 = vadd.xlane.f32.xlu1 %v1874_v53 }
 0x6f0   : > { %v1876_v61 = vpop.xlane.xlu1 %1875 }
 0x6f1   : > { %v1877_v8 = vmul.f32 0.03125, %v1876_v61 }
 0x6f3   : > { %v1878_v9 = vadd.f32 1e-05, %v1877_v8 }
 0x6f5   : > { %2653 = vrsqrt.f32 %v1878_v9 }
 0x702   : > { %v2654_v10 = vpop.eup %2653 }
 0x703   : > { %v1880_v12 = vmul.f32 %v2654_v10, %v1872_v6 }
 0x705   : > { %v1887_v14 = vmul.f32 %v2235_v11, %v1880_v12 }
 0x707   : > { %v1894_v15 = vadd.f32 %v2236_v13, %v1887_v14 }
 0x709   : > { %v1895_v16 = vpack.c.bf16 %v1894_v15, %v1894_v15 }
 0x70b   : > { %2501 = vmatmul.mubr.msk.bf16.vlgmr.msra.gmra.mxu0 %vm488_vm0, %v1895_v16 }
 0x7cb   : > { %v1956_v27 = vpop.f32.mrf.mxu0 }
 0x7cc   : > { %v1957_v28 = vadd.f32 %v2237_v26, %v1956_v27 }
 0x7cd   : > { %v2502_v29 = vpop.f32.mrf.mxu0 }
 0x7ce   : > { %v1962_v30 = vmul.f32 %v1957_v28, %v1957_v28 }
 0x7cf   : > { %v1959_v31 = vpop.f32.mrf.mxu0 }
 0x7d0   : > { %v1963_v32 = vmul.f32 %v1962_v30, %v1957_v28 }
 0x7d1   : > { %v2503_v33 = vpop.f32.mrf.mxu0 }
 0x7d2   : > { %v1964_v34 = vmul.f32 0.044715, %v1963_v32 }
 0x7d4   : > { %v1965_v35 = vadd.f32 %v1964_v34, %v1957_v28 }
 0x7d6   : > { %v1966_v36 = vmul.f32 0.7978846, %v1965_v35 }
 0x7d8   : > { %2655 = vtanh.f32 %v1966_v36 }
 0x7e5   : > { %v2656_v23 = vpop.eup %2655 }
 0x7e6   : > { %v1968_v37 = vadd.f32 1.0, %v2656_v23 }
 0x7e8   : > { %v1969_v38 = vmul.f32 0.5, %v1968_v37 }
 0x7ea   : > { %v1970_v39 = vmul.f32 %v1969_v38, %v1957_v28 }
 0x7ec   : > { %v1971_v40 = vpack.c.bf16 %v1970_v39, %v1970_v39 }
 0x7ee   : > { %2521 = vmatmul.mubr.bf16.vlgmr.msra.gmra.mxu1 %v1971_v40 }
 0x8ae   : > { %v2077_v42 = vpop.f32.mrf.mxu1 }
 0x8af   : > { %v2078_v43 = vadd.f32 %v2241_v41, %v2077_v42 }
 0x8b0   : > { %v2522_v44 = vpop.f32.mrf.mxu1 }
 0x8b1   : > { %v2083_v45 = vadd.f32 %v2078_v43, %v3172_v1 }
 0x8b2   : > { %v2080_v46 = vpop.f32.mrf.mxu1 }
 0x8b3   : > { %2084 = vst.msk [vmem:[%s474_s21] sm:$0xff] %vm488_vm0, %v2083_v45 }
 0x8b4   : > { %v2523_v47 = vpop.f32.mrf.mxu1 }
 0x8b5   : > { %2670 = shalt.err (!%p2667_p6)
}
 0x8b6   : > { %s2671_s1 = scalar_lea.hbm %s3236_s3, 128  ;;  %s2675_s24 = scalar_lea.hbm %s3332_s2, 512 }
 0x8b7   : > { %p2672_p7 = scmp.ne.s32.totalorder %s3236_s3, %s2671_s1  ;;  %p2676_p11 = scmp.lt.s32.totalorder %s3236_s3, %s3332_s2 }
 0x8b8   : > { %p2677_p12 = scmp.lt.s32.totalorder %s2675_s24, %s2671_s1 }
 0x8b9   : > { %p2673_p9 = pnand %p2672_p7, %p2880_p3 }
 0x8ba   : > { %p2678_p13 = por %p2677_p12, %p2676_p11 }
 0x8bb   : > { %p2674_p10 = pneg %p2673_p9 }
 0x8bd   : > { %p2679_p0 = pnand %p2678_p13, %p2674_p10 }
 0x8bf   : > { %2682 = shalt.err (!%p2679_p0)
}
 0x8c0   : > { %2524 = dma.vmem_to_hbm [thread:$0]  (%p2880_p3), %s3238_s22, 128, %s3236_s3, %s2086_s16  }
 0x8c1 PF: > { %s3333_s28 = sld [smem:[#allocation5_spill]]  ;;  %p2530_p1 = scmp.ge.s32.totalorder %s2749_s20, 2 }
 0x8c3   : > { %p2527_p2 = pnand %p2530_p1, %p2889_p8 }
 0x8c5   : > { %p2528_p4 = pneg %p2527_p2 }
 0x8c7   : > { %s2113_s17 = sand.u32 1, %s3333_s28  }
 0x8c8   : > { %s2114_s14 = scalar_lea.sflag [#allocation3], %s2113_s17 }
 0x8c9   : > { %2716 = dma.done.wait (%p2528_p4), %s2114_s14, 128  }
 0x8ca   : > { %2718 = vsyncadd (%p2528_p4), %s2114_s14, 4294967168  ;;  %s27_s20 = sadd.s32 1, %s2749_s20   ;;  %s3335_s16 = sld [smem:[#allocation6_spill]] }
 0x8cb   : > { %p24_p5 = scmp.ge.s32.totalorder %s27_s20, 6   ;;  %s3336_s18 = sld [smem:[#allocation7_spill]] }
 0x8cc   : > { %s3337_s3 = sld [smem:[#allocation9_spill]]  ;;  %s3338_s29 = smov %s2725_s30 }
 0x8cd   : > { %s3339_s30 = smov %s2729_s15  ;;  %s3340_s15 = smov %s2898_s23 }
 0x8ce   : > { %s3341_s17 = smov %s2745_s19  ;;  %26 = sbr.rel (!%p24_p5) target bundleno = 12 (0xc), region = 112 }
 0x8d2   : > { %s3342_s19 = smov %s3337_s3 }
 0x8d3   :  { %2119 = vsyncpa [#allocation3], 1 }
 0x8d4   :  { %2121 = vsyncpa [#allocation3 + $0x1], 1 }

</bundles_post_ra>
